<compile_context>
chip_gen: v7x
topology: tpu7x:2x2x1
jax: 0.10.0
libtpu: 0.0.40
codegen_flags: <defaults>
</compile_context>

<pallas_src>
import jax
import jax.numpy as jnp
from jax.experimental import pallas as pl
from jax.experimental.pallas import tpu as pltpu

NEG_SLOPE = 0.01   # torch.nn.LeakyReLU default negative_slope
SUBLANE = 8        # f32 sublane count
MAX_ROW_TILE = 4096


def _round_up(x, m):
    return ((x + m - 1) // m) * m


def _choose_row_tile(batch):
    """Row tile: multiple of 8 sublanes, <= MAX_ROW_TILE, and >= 2 tiles once the
    batch is large enough so both v7x TensorCores get work (no-op on v5e/v6e)."""
    if batch <= 2 * SUBLANE:
        return batch                     # one tiny tile; block dim == full array dim is legal
    target_tiles = max(2, pl.cdiv(batch, MAX_ROW_TILE))
    tb = _round_up(pl.cdiv(batch, target_tiles), SUBLANE)
    return min(tb, MAX_ROW_TILE)


def _fczero_kernel_factory(num_layers):
    """Builds a kernel closed over the (static) number of linear layers."""
    num_res = num_layers - 1  # number of ReZero residual blocks

    def kernel(*refs):
        # refs = (x, w0, b0, w1, b1, ..., w_{L-1}, b_{L-1}, alphas, out)
        x_ref = refs[0]
        wb_refs = refs[1:1 + 2 * num_layers]
        alpha_ref = refs[1 + 2 * num_layers]        # SMEM, shape (num_layers - 1,)
        o_ref = refs[-1]

        h = x_ref[...].astype(jnp.float32)
        # ReZero blocks: h = h + alpha_i * LeakyReLU(h @ W_i + b_i)
        for i in range(num_res):
            w = wb_refs[2 * i][...]
            b = wb_refs[2 * i + 1][...]
            z = jnp.dot(h, w, preferred_element_type=jnp.float32) + b
            a = jnp.maximum(z, NEG_SLOPE * z)       # LeakyReLU (mul + max)
            h = h + alpha_ref[i] * a
        # Final plain linear layer.
        w_last = wb_refs[2 * num_res][...]
        b_last = wb_refs[2 * num_res + 1][...]
        out = jnp.dot(h, w_last, preferred_element_type=jnp.float32) + b_last
        o_ref[...] = out.astype(o_ref.dtype)

    return kernel


def fczero_forward(x, weights, biases, alphas):
    """x: [B, D_in]; weights[i]: [d_i, d_{i+1}]; biases[i]: [d_{i+1}]; alphas: [L-1]."""
    num_layers = len(weights)
    B, d_in = x.shape
    out_dim = weights[-1].shape[1]

    tb = _choose_row_tile(B)
    # Trailing partial block (B not a multiple of tb) is handled by Pallas: bounded
    # input DMA + masked output store.  Rows are independent, so this is exact.
    num_tiles = pl.cdiv(B, tb)

    kernel = _fczero_kernel_factory(num_layers)

    in_specs = [pl.BlockSpec((tb, d_in), lambda i: (i, 0))]     # x: tiled over batch
    args = [x]
    for w, b in zip(weights, biases):
        # Constant index_maps -> weights/biases stay VMEM-resident across grid steps.
        in_specs.append(pl.BlockSpec(w.shape, lambda i: (0, 0)))
        in_specs.append(pl.BlockSpec((1, b.shape[-1]), lambda i: (0, 0)))
        args += [w, b.reshape(1, -1)]               # metadata-only reshape, no copy
    in_specs.append(pl.BlockSpec(memory_space=pltpu.MemorySpace.SMEM))   # alphas
    args.append(alphas)

    out_specs = pl.BlockSpec((tb, out_dim), lambda i: (i, 0))

    return pl.pallas_call(
        kernel,
        out_shape=jax.ShapeDtypeStruct((B, out_dim), x.dtype),
        grid=(num_tiles,),
        in_specs=in_specs,
        out_specs=out_specs,
        compiler_params=pltpu.CompilerParams(
            dimension_semantics=("parallel",),      # shard batch tiles across v7x's 2 TCs
        ),
    )(*args)


def fczero_ref(x, weights, biases, alphas):
    """Pure-JAX reference of FcZero.forward."""
    h = x.astype(jnp.float32)
    for i in range(len(weights) - 1):
        z = h @ weights[i] + biases[i]
        a = jnp.where(z >= 0.0, z, NEG_SLOPE * z)
        h = h + alphas[i] * a
    return h @ weights[-1] + biases[-1]


if __name__ == "__main__":
    # Module config: FcZero(layers=[32, 32, 32, 16]) -> 3 linear layers, 2 ReZero blocks.
    layers = [32, 32, 32, 16]

    key = jax.random.PRNGKey(0)
    keys = jax.random.split(key, 2 * (len(layers) - 1) + 2)

    weights, biases = [], []
    for li, (d_in, d_out) in enumerate(zip(layers[:-1], layers[1:])):
        bound = 1.0 / jnp.sqrt(d_in)  # PyTorch nn.Linear default init range
        w = jax.random.uniform(keys[2 * li], (d_in, d_out), jnp.float32, -bound, bound)
        b = jax.random.uniform(keys[2 * li + 1], (d_out,), jnp.float32, -bound, bound)
        weights.append(w)
        biases.append(b)

    # alphas has shape (len(layers)-1,) per __init__ (zeros); use nonzero values here
    # so the residual path is actually exercised numerically.
    alphas = 0.1 * jnp.arange(1, len(layers), dtype=jnp.float32)

    fwd = jax.jit(fczero_forward)

    ok = True
    # Test 1: small batch (single grid step, block rows == B).
    B = 8
    x = jax.random.uniform(keys[-2], (B, layers[0]), jnp.float32, -1.0, 1.0)
    out = jax.block_until_ready(fwd(x, weights, biases, alphas))
    ref = fczero_ref(x, weights, biases, alphas)
    ok &= out.shape == (B, layers[-1])
    ok &= bool(jnp.allclose(out, ref, atol=1e-4, rtol=1e-4))

    # Test 2: ragged large batch (2 parallel tiles + masked trailing partial block).
    B2 = 1000
    x2 = jax.random.uniform(keys[-1], (B2, layers[0]), jnp.float32, -1.0, 1.0)
    out2 = jax.block_until_ready(fwd(x2, weights, biases, alphas))
    ref2 = fczero_ref(x2, weights, biases, alphas)
    ok &= out2.shape == (B2, layers[-1])
    ok &= bool(jnp.allclose(out2, ref2, atol=1e-4, rtol=1e-4))

    assert ok
    print("KERNEL_OK")
</pallas_src>

<mosaic_0001>
module attributes {stable_mosaic.version = 11 : i64} {
  func.func @kernel(%arg0: i32, %arg1: memref<8x32xf32, #tpu.memory_space<vmem>>, %arg2: memref<32x32xf32, #tpu.memory_space<vmem>>, %arg3: memref<1x32xf32, #tpu.memory_space<vmem>>, %arg4: memref<32x32xf32, #tpu.memory_space<vmem>>, %arg5: memref<1x32xf32, #tpu.memory_space<vmem>>, %arg6: memref<32x16xf32, #tpu.memory_space<vmem>>, %arg7: memref<1x16xf32, #tpu.memory_space<vmem>>, %arg8: memref<3xf32, #tpu.memory_space<smem>>, %arg9: memref<8x16xf32, #tpu.memory_space<vmem>>) attributes {dimension_semantics = [#tpu.dimension_semantics<parallel>], iteration_bounds = array<i64: 1>, scalar_prefetch = 0 : i64, scratch_operands = 0 : i64, tpu.core_type = #tpu.core_type<tc>, window_params = [{transform_indices = @transform_0, window_bounds = array<i64: 8, 32>}, {pipeline_mode = #tpu.pipeline_mode<synchronous>, transform_indices = @transform_1, window_bounds = array<i64: 32, 32>}, {pipeline_mode = #tpu.pipeline_mode<synchronous>, transform_indices = @transform_2, window_bounds = array<i64: 1, 32>}, {pipeline_mode = #tpu.pipeline_mode<synchronous>, transform_indices = @transform_3, window_bounds = array<i64: 32, 32>}, {pipeline_mode = #tpu.pipeline_mode<synchronous>, transform_indices = @transform_4, window_bounds = array<i64: 1, 32>}, {pipeline_mode = #tpu.pipeline_mode<synchronous>, transform_indices = @transform_5, window_bounds = array<i64: 32, 16>}, {pipeline_mode = #tpu.pipeline_mode<synchronous>, transform_indices = @transform_6, window_bounds = array<i64: 1, 16>}, {transform_indices = @transform_7, window_bounds = array<i64: 3>}, {transform_indices = @transform_8, window_bounds = array<i64: 8, 16>}]} {
    %c0 = arith.constant 0 : index
    %c0_0 = arith.constant 0 : index
    %0 = vector.load %arg1[%c0, %c0_0] : memref<8x32xf32, #tpu.memory_space<vmem>>, vector<8x32xf32>
    %c0_1 = arith.constant 0 : index
    %c0_2 = arith.constant 0 : index
    %1 = vector.load %arg2[%c0_1, %c0_2] : memref<32x32xf32, #tpu.memory_space<vmem>>, vector<32x32xf32>
    %c0_3 = arith.constant 0 : index
    %c0_4 = arith.constant 0 : index
    %2 = vector.load %arg3[%c0_3, %c0_4] : memref<1x32xf32, #tpu.memory_space<vmem>>, vector<1x32xf32>
    %cst = arith.constant dense<0.000000e+00> : vector<8x32xf32>
    %3 = tpu.matmul %0, %1, %cst {dimension_numbers = #tpu.dot_dimension_numbers<[1], [0], [0], [1], [0, 0, 1, 1], [], []>} : vector<8x32xf32>, vector<32x32xf32>, vector<8x32xf32> -> vector<8x32xf32>
    %4 = vector.broadcast %2 : vector<1x32xf32> to vector<8x32xf32>
    %5 = arith.addf %3, %4 : vector<8x32xf32>
    %cst_5 = arith.constant 0.00999999977 : f32
    %6 = vector.broadcast %cst_5 : f32 to vector<8x32xf32>
    %7 = arith.mulf %6, %5 : vector<8x32xf32>
    %8 = arith.maximumf %5, %7 : vector<8x32xf32>
    %c0_6 = arith.constant 0 : index
    %9 = memref.load %arg8[%c0_6] : memref<3xf32, #tpu.memory_space<smem>>
    %10 = vector.broadcast %9 : f32 to vector<8x32xf32>
    %11 = arith.mulf %10, %8 : vector<8x32xf32>
    %12 = arith.addf %0, %11 : vector<8x32xf32>
    %c0_7 = arith.constant 0 : index
    %c0_8 = arith.constant 0 : index
    %13 = vector.load %arg4[%c0_7, %c0_8] : memref<32x32xf32, #tpu.memory_space<vmem>>, vector<32x32xf32>
    %c0_9 = arith.constant 0 : index
    %c0_10 = arith.constant 0 : index
    %14 = vector.load %arg5[%c0_9, %c0_10] : memref<1x32xf32, #tpu.memory_space<vmem>>, vector<1x32xf32>
    %cst_11 = arith.constant dense<0.000000e+00> : vector<8x32xf32>
    %15 = tpu.matmul %12, %13, %cst_11 {dimension_numbers = #tpu.dot_dimension_numbers<[1], [0], [0], [1], [0, 0, 1, 1], [], []>} : vector<8x32xf32>, vector<32x32xf32>, vector<8x32xf32> -> vector<8x32xf32>
    %16 = vector.broadcast %14 : vector<1x32xf32> to vector<8x32xf32>
    %17 = arith.addf %15, %16 : vector<8x32xf32>
    %cst_12 = arith.constant 0.00999999977 : f32
    %18 = vector.broadcast %cst_12 : f32 to vector<8x32xf32>
    %19 = arith.mulf %18, %17 : vector<8x32xf32>
    %20 = arith.maximumf %17, %19 : vector<8x32xf32>
    %c1 = arith.constant 1 : index
    %21 = memref.load %arg8[%c1] : memref<3xf32, #tpu.memory_space<smem>>
    %22 = vector.broadcast %21 : f32 to vector<8x32xf32>
    %23 = arith.mulf %22, %20 : vector<8x32xf32>
    %24 = arith.addf %12, %23 : vector<8x32xf32>
    %c0_13 = arith.constant 0 : index
    %c0_14 = arith.constant 0 : index
    %25 = vector.load %arg6[%c0_13, %c0_14] : memref<32x16xf32, #tpu.memory_space<vmem>>, vector<32x16xf32>
    %c0_15 = arith.constant 0 : index
    %c0_16 = arith.constant 0 : index
    %26 = vector.load %arg7[%c0_15, %c0_16] : memref<1x16xf32, #tpu.memory_space<vmem>>, vector<1x16xf32>
    %cst_17 = arith.constant dense<0.000000e+00> : vector<8x16xf32>
    %27 = tpu.matmul %24, %25, %cst_17 {dimension_numbers = #tpu.dot_dimension_numbers<[1], [0], [0], [1], [0, 0, 1, 1], [], []>} : vector<8x32xf32>, vector<32x16xf32>, vector<8x16xf32> -> vector<8x16xf32>
    %28 = vector.broadcast %26 : vector<1x16xf32> to vector<8x16xf32>
    %29 = arith.addf %27, %28 : vector<8x16xf32>
    %c0_18 = arith.constant 0 : index
    %c0_19 = arith.constant 0 : index
    %30 = vector.load %arg9[%c0_18, %c0_19] : memref<8x16xf32, #tpu.memory_space<vmem>>, vector<8x16xf32>
    tpu.vector_store %arg9[%c0_18, %c0_19], %29 {strides = array<i32>} : memref<8x16xf32, #tpu.memory_space<vmem>>, vector<8x16xf32>,
    return
  }
  func.func @transform_0(%arg0: i32) -> (i32, i32) {
    %c0_i32 = arith.constant 0 : i32
    %c0_i32_0 = arith.constant 0 : i32
    return %arg0, %c0_i32 : i32, i32
  }
  func.func @transform_1(%arg0: i32) -> (i32, i32) {
    %c0_i32 = arith.constant 0 : i32
    %c0_i32_0 = arith.constant 0 : i32
    %c0_i32_1 = arith.constant 0 : i32
    return %c0_i32, %c0_i32_0 : i32, i32
  }
  func.func @transform_2(%arg0: i32) -> (i32, i32) {
    %c0_i32 = arith.constant 0 : i32
    %c0_i32_0 = arith.constant 0 : i32
    %c0_i32_1 = arith.constant 0 : i32
    return %c0_i32, %c0_i32_0 : i32, i32
  }
  func.func @transform_3(%arg0: i32) -> (i32, i32) {
    %c0_i32 = arith.constant 0 : i32
    %c0_i32_0 = arith.constant 0 : i32
    %c0_i32_1 = arith.constant 0 : i32
    return %c0_i32, %c0_i32_0 : i32, i32
  }
  func.func @transform_4(%arg0: i32) -> (i32, i32) {
    %c0_i32 = arith.constant 0 : i32
    %c0_i32_0 = arith.constant 0 : i32
    %c0_i32_1 = arith.constant 0 : i32
    return %c0_i32, %c0_i32_0 : i32, i32
  }
  func.func @transform_5(%arg0: i32) -> (i32, i32) {
    %c0_i32 = arith.constant 0 : i32
    %c0_i32_0 = arith.constant 0 : i32
    %c0_i32_1 = arith.constant 0 : i32
    return %c0_i32, %c0_i32_0 : i32, i32
  }
  func.func @transform_6(%arg0: i32) -> (i32, i32) {
    %c0_i32 = arith.constant 0 : i32
    %c0_i32_0 = arith.constant 0 : i32
    %c0_i32_1 = arith.constant 0 : i32
    return %c0_i32, %c0_i32_0 : i32, i32
  }
  func.func @transform_7(%arg0: i32) -> i32 {
    %c0_i32 = arith.constant 0 : i32
    %c0_i32_0 = arith.constant 0 : i32
    return %c0_i32 : i32
  }
  func.func @transform_8(%arg0: i32) -> (i32, i32) {
    %c0_i32 = arith.constant 0 : i32
    %c0_i32_0 = arith.constant 0 : i32
    return %arg0, %c0_i32 : i32, i32
  }
}

</mosaic_0001>

<bundles_post_ra>
// kernel: fczero_forward.1
= control target key start
LH: loop header
LB: loop body
LE: loop exit
PB: predicated region body
PF: predicated region fallthrough
CT: control target
= control target key end

     0   :  { %13 = vsyncpa [#allocation3], 0  ;;  %s606_s0 = inlined_call_operand.hbm [shape: f32[8,32], index: 0, kind: input, shape index: {}]   ;;  %s607_s1 = inlined_call_operand.vmem [shape: f32[32,32], index: 1, kind: input, shape index: {}]   ;;  %s608_s2 = inlined_call_operand.vmem [shape: f32[1,32], index: 2, kind: input, shape index: {}]   ;;  %s609_s3 = inlined_call_operand.vmem [shape: f32[32,32], index: 3, kind: input, shape index: {}]   ;;  %s610_s4 = inlined_call_operand.vmem [shape: f32[1,32], index: 4, kind: input, shape index: {}]   ;;  %s611_s5 = inlined_call_operand.vmem [shape: f32[32,16], index: 5, kind: input, shape index: {}]   ;;  %s612_s6 = inlined_call_operand.vmem [shape: f32[1,16], index: 6, kind: input, shape index: {}]   ;;  %s613_s7 = inlined_call_operand.vmem [shape: f32[3], index: 7, kind: input, shape index: {}]   ;;  %s614_s8 = inlined_call_operand.hbm [shape: f32[8,16], index: 8, kind: output, shape index: {}]  }
   0x1   :  { %14 = vsyncpa [#allocation5], 0 }
   0x2   :  { %15 = vsyncpa [#allocation4], 0  ;;  %s44_s29 = sshll.u32 %s613_s7, 4  ;;  %s480_s30 = smov [#allocation2]   ;;  %s45_s29 = int_to_ptr.vmem [resolvable:$true] %s44_s29 }
   0x3   :  { %s22_s9 = sshll.u32 %s480_s30, 4  ;;  %s418_s12 = scalar_lea.hbm %s606_s0, 128  ;;  %s23_s9 = int_to_ptr.vmem [resolvable:$true] %s22_s9 }
   0x4   :  { %p419_p0 = scmp.ne.s32.totalorder %s606_s0, %s418_s12  ;;  %p422_p1 = scmp.lt.u32.totalorder %s418_s12, %s606_s0 }
   0x6   :  { %p424_p2 = pnand %p422_p1, %p419_p0 }
   0x8   :  { %427 = shalt.err (!%p424_p2)
}
   0x9   :  { %s428_s17 = scalar_lea.vmem %s23_s9, 128  ;;  %p433_p4 = scmp.lt.s32.totalorder %s23_s9, %s23_s9 }
   0xa   :  { %p429_p3 = scmp.ne.s32.totalorder %s23_s9, %s428_s17  ;;  %p434_p5 = scmp.lt.s32.totalorder %s428_s17, %s428_s17 }
   0xc   :  { %p435_p6 = por %p434_p5, %p433_p4 }
   0xe   :  { %p436_p7 = pnand %p435_p6, %p429_p3 }
  0x10   :  { %439 = shalt.err (!%p436_p7)
}
  0x11   :  { %25 = dma.hbm_to_vmem [thread:$0]  %s606_s0, 128, %s23_s9, [#allocation3]  }
  0x12   :  { %s440_s19 = scalar_lea.vmem %s45_s29, 16  ;;  %p445_p9 = scmp.lt.s32.totalorder %s45_s29, %s45_s29 }
  0x13   :  { %p441_p8 = scmp.ne.s32.totalorder %s45_s29, %s440_s19  ;;  %p446_p10 = scmp.lt.s32.totalorder %s440_s19, %s440_s19 }
  0x15   :  { %p447_p11 = por %p446_p10, %p445_p9 }
  0x17   :  { %p448_p12 = pnand %p447_p11, %p441_p8 }
  0x19   :  { %451 = shalt.err (!%p448_p12)
}
  0x1a   :  { %s481_s20 = smov [#allocation6]  }
  0x1b   :  { %47 = dma.vmem_to_smem %s45_s29, 16, %s481_s20, [#allocation5]  }
  0x1c   :  { %474 = dma.done.wait [#allocation3], 128  }
  0x1d   :  { %475 = vsyncadd [#allocation3], 4294967168 }
  0x1e   :  { %476 = dma.done.wait [#allocation5], 16  }
  0x1f   :  { %477 = vsyncadd [#allocation5], 4294967280 }
  0x20   :  { %54 = sfence }
  0x21   :  { %v56_v0 = vld [vmem:[%s607_s1] sm:$0xff]  ;;  %v57_v1 = vld [vmem:[%s607_s1 + $0x8] sm:$0xff]  ;;  %v58_v2 = vld [vmem:[%s607_s1 + $0x10] sm:$0xff]  ;;  %v482_v3 = vmov 0.0|0.0   ;;  %vm483_vm0 = vmmov 0   ;;  %v484_v6 = vmov 0.0  }
  0x22   :  { %394 = vmatprep.subr.bf16.mxu0 %v482_v3  ;;  %v395_v4 = vpack.c.bf16 %v57_v1, %v56_v0  ;;  %v59_v5 = vld [vmem:[%s607_s1 + $0x18] sm:$0xff]  ;;  %369 = vmatprep.mubr.msk.f32.mxu0 %vm483_vm0, %v484_v6  ;;  %v55_v8 = vld [vmem:[#allocation2] sm:$0xff]  ;;  %vm67_vm1 = vcmask 261120   ;;  %v148_v10 = vld [vmem:[%s609_s3 + $0x8] sm:$0xff]  ;;  %s143_s13 = sld [smem:[#allocation6]]  ;;  %s343_s21 = sld [smem:[#allocation6 + $0x1]] }
  0x23   :  { %400 = vmatprep.subr.bf16.mxu1 %v482_v3  ;;  %380 = vmatprep.mubr.msk.f32.mxu1 %vm483_vm0, %v484_v6  ;;  %v398_v7 = vpack.c.bf16 %v59_v5, %v58_v2  ;;  %v147_v9 = vld [vmem:[%s609_s3] sm:$0xff]  ;;  %v149_v12 = vld [vmem:[%s609_s3 + $0x10] sm:$0xff]  ;;  %v150_v13 = vld [vmem:[%s609_s3 + $0x18] sm:$0xff]  ;;  %vm321_vm2 = vcmask 130048  }
  0x24   :  { %396 = vmatpush3.bf16.msra.mxu0 %v395_v4  ;;  %v401_v11 = vpack.c.bf16 %v148_v10, %v147_v9  ;;  %v404_v14 = vpack.c.bf16 %v150_v13, %v149_v12  ;;  %v339_v15 = vld [vmem:[%s608_s2] ss:$0 sm:$0xff]  ;;  %v238_v25 = vld [vmem:[%s611_s5 + $0x8] sm:$0xff]  ;;  %v239_v27 = vld [vmem:[%s611_s5 + $0x10] sm:$0xff] }
  0x25   :  { %397 = vmatprep.subr.bf16.mxu0 %v482_v3  ;;  %v237_v24 = vld [vmem:[%s611_s5] sm:$0xff]  ;;  %v240_v28 = vld [vmem:[%s611_s5 + $0x18] sm:$0xff]  ;;  %s485_s5 = smov [#allocation7]  }
  0x26   :  { %402 = vmatpush3.bf16.msra.mxu1 %v401_v11  ;;  %v407_v26 = vpack.c.bf16 %v238_v25, %v237_v24  ;;  %v410_v29 = vpack.c.bf16 %v240_v28, %v239_v27  ;;  %v341_v30 = vld [vmem:[%s610_s4] ss:$0 sm:$0xff]  ;;  %s329_s25 = sshll.u32 %s485_s5, 4  ;;  %s330_s25 = int_to_ptr.vmem [resolvable:$true] %s329_s25 }
  0x27   :  { %403 = vmatprep.subr.bf16.mxu1 %v482_v3  ;;  %v344_v39 = vld [vmem:[%s612_s6] ss:$0 sm:$0xff]  ;;  %s452_s4 = scalar_lea.vmem %s330_s25, 128  ;;  %p457_p0 = scmp.lt.s32.totalorder %s330_s25, %s330_s25 }
  0x28   :  { %399 = vmatpush3.bf16.msra.mxu0 %v398_v7  ;;  %v144_v20 = vstv %s143_s13  ;;  %v234_v35 = vstv %s343_s21  ;;  %p453_p13 = scmp.ne.s32.totalorder %s330_s25, %s452_s4  ;;  %p458_p1 = scmp.lt.s32.totalorder %s452_s4, %s452_s4 }
  0x29   :  { %406 = vmatprep.subr.bf16.mxu0 %v482_v3 }
  0x2a   :  { %405 = vmatpush3.bf16.msra.mxu1 %v404_v14  ;;  %p459_p2 = por %p458_p1, %p457_p0 }
  0x2b   :  { %370 = vmatmul.mubr.msk.f32.vlgmr.msra.gmra.mrb[0].mxu0 %vm67_vm1, %v55_v8 }
  0x2c   :  { %391 = vmatprep.mubr.msk.f32.mxu0 %vm483_vm0, %v484_v6  ;;  %408 = vmatpush3.bf16.msra.mxu0 %v407_v26  ;;  %p460_p3 = pnand %p459_p2, %p453_p13 }
  0x2d   :  { %409 = vmatprep.subr.bf16.mxu0 %v482_v3 }
  0x30   :  { %411 = vmatpush3.bf16.msra.mxu0 %v410_v29 }
  0xfe   :  { %v137_v16 = vpop.f32.mrb[0].mxu0 }
  0xff   :  { %v138_v17 = vadd.f32 %v339_v15, %v137_v16  ;;  %v371_v18 = vpop.f32.mrb[1].mxu0 }
 0x101   :  { %v141_v19 = vmul.f32 0.01, %v138_v17 }
 0x103   :  { %v142_v21 = vmax.f32 %v138_v17, %v141_v19 }
 0x105   :  { %v145_v22 = vmul.f32 %v144_v20, %v142_v21 }
 0x107   :  { %v146_v23 = vadd.f32 %v145_v22, %v55_v8 }
 0x109   :  { %381 = vmatmul.mubr.msk.f32.vlgmr.msra.gmra.mrb[0].mxu1 %vm67_vm1, %v146_v23 }
 0x1dc   :  { %v227_v31 = vpop.f32.mrb[0].mxu1 }
 0x1dd   :  { %v228_v32 = vadd.f32 %v341_v30, %v227_v31  ;;  %v382_v33 = vpop.f32.mrb[1].mxu1 }
 0x1df   :  { %v231_v34 = vmul.f32 0.01, %v228_v32 }
 0x1e1   :  { %v232_v36 = vmax.f32 %v228_v32, %v231_v34 }
 0x1e3   :  { %v235_v37 = vmul.f32 %v234_v35, %v232_v36 }
 0x1e5   :  { %v236_v38 = vadd.f32 %v235_v37, %v146_v23 }
 0x1e7   :  { %392 = vmatmul.mubr.msk.f32.vlgmr.msra.gmra.mrb[2].mxu0 %vm67_vm1, %v236_v38 }
 0x2ba   :  { %v317_v40 = vpop.f32.mrb[2].mxu0 }
 0x2bb   :  { %v318_v41 = vadd.f32 %v344_v39, %v317_v40  ;;  %v393_v42 = vpop.f32.mrb[3].mxu0 }
 0x2bd   :  { %322 = vst.msk [vmem:[#allocation7] sm:$0xff] %vm321_vm2, %v318_v41 }
 0x2be   :  { %463 = shalt.err (!%p460_p3)
}
 0x2bf   :  { %s464_s28 = scalar_lea.hbm %s614_s8, 128 }
 0x2c0   :  { %p465_p4 = scmp.ne.s32.totalorder %s614_s8, %s464_s28  ;;  %p468_p5 = scmp.lt.u32.totalorder %s464_s28, %s614_s8 }
 0x2c2   :  { %p470_p6 = pnand %p468_p5, %p465_p4 }
 0x2c4   :  { %473 = shalt.err (!%p470_p6)
}
 0x2c5   :  { %332 = dma.vmem_to_hbm [thread:$0]  %s330_s25, 128, %s614_s8, [#allocation4]  }
 0x2c6   :  { %478 = dma.done.wait [#allocation4], 128  }
 0x2c7   :  { %479 = vsyncadd [#allocation4], 4294967168 }
 0x2c8   :  { %336 = vsyncpa [#allocation3], 1 }
 0x2c9   :  { %337 = vsyncpa [#allocation4], 1 }
 0x2ca   :  { %338 = vsyncpa [#allocation5], 1 }

</bundles_post_ra>
